<compile_context>
chip_gen: v5e
topology: v5e:2x2
jax: 0.10.0
libtpu: 0.0.40
codegen_flags: <defaults>
</compile_context>

<pallas_src>
import functools

import jax
import jax.numpy as jnp
from jax import lax
from jax.experimental import pallas as pl
from jax.experimental.pallas import tpu as pltpu

_EPS = 1e-12            # torch.nn.functional.normalize default eps
_EPS2 = _EPS * _EPS     # clamp on squared norm (exactly equivalent to F.normalize)
_OUT_SUB, _OUT_LANE = 8, 128
_OUT_INV = 1.0 / float(_OUT_SUB * _OUT_LANE)   # 1/1024 (power of 2, exact)


def _byol_partials_kernel(z1_ref, z2_ref, part_ref, *, n_rows, tile_rows):
    i = pl.program_id(0)

    z1 = z1_ref[...].astype(jnp.float32)
    z2 = z2_ref[...].astype(jnp.float32)

    # Per-row squared norms and dot product (lane reductions -> XLU).
    ss1 = jnp.sum(z1 * z1, axis=-1, keepdims=True)    # (tile_rows, 1)
    ss2 = jnp.sum(z2 * z2, axis=-1, keepdims=True)    # (tile_rows, 1)
    d12 = jnp.sum(z1 * z2, axis=-1, keepdims=True)    # (tile_rows, 1)

    # cos = dot / (max(||z1||, eps) * max(||z2||, eps)), via rsqrt on the EUP.
    inv1 = lax.rsqrt(jnp.maximum(ss1, jnp.float32(_EPS2)))
    inv2 = lax.rsqrt(jnp.maximum(ss2, jnp.float32(_EPS2)))
    cos = d12 * inv1 * inv2                            # (tile_rows, 1)

    # Mask tail rows of the last (partial) tile; padded rows may hold garbage.
    row = i * tile_rows + lax.broadcasted_iota(jnp.int32, cos.shape, 0)
    cos = jnp.where(row < n_rows, cos, 0.0)

    # Write tile_sum/1024 replicated over the whole (1, 8, 128) block so the
    # wrapper can do a contiguous jnp.sum(partials) (no strided gather) and the
    # per-step HBM write stays fully lane-dense/unmasked.
    tile_sum = jnp.sum(cos) * jnp.float32(_OUT_INV)
    part_ref[...] = jnp.broadcast_to(tile_sum, part_ref.shape).astype(jnp.float32)


def _round_up(x, m):
    return ((x + m - 1) // m) * m


def _byol_loss_jax(z1, z2):
    """Fused plain-JAX path (tiny inputs / wide-D fallback / reference)."""
    z1 = z1.astype(jnp.float32)
    z2 = z2.astype(jnp.float32)
    ss1 = jnp.sum(z1 * z1, axis=-1)
    ss2 = jnp.sum(z2 * z2, axis=-1)
    d12 = jnp.sum(z1 * z2, axis=-1)
    cos = d12 * lax.rsqrt(jnp.maximum(ss1, _EPS2)) * lax.rsqrt(jnp.maximum(ss2, _EPS2))
    return (2.0 - 2.0 * jnp.mean(cos)).astype(jnp.float32)


def _vmem_capacity_bytes():
    try:
        return int(pltpu.get_tpu_info().vmem_capacity_bytes)
    except Exception:
        return 64 << 20   # conservative: v7x per-TensorCore VMEM


def byol_loss(z1, z2, *, block_bytes=8 * 1024 * 1024, min_kernel_bytes=2 * 1024 * 1024,
              target_steps=8):
    assert z1.shape == z2.shape and z1.ndim >= 2
    d = z1.shape[-1]
    z1 = z1.reshape(-1, d)
    z2 = z2.reshape(-1, d)
    n = z1.shape[0]
    itemsize = jnp.dtype(z1.dtype).itemsize

    # --- Tiny-input fast path: launch + grid-step overhead dominates; XLA fuses this.
    if n * d * itemsize < min_kernel_bytes:
        return _byol_loss_jax(z1, z2)

    sub_mult = max(8, 32 // itemsize)   # packed-sublane multiple: 8 f32 / 16 bf16 / 32 i8

    # VMEM footprint per tile row:
    #   2 inputs x 2 pipeline buffers of the input block  -> 4 * d * itemsize
    #   in-kernel f32 temporaries (casts + 3 products)    -> 4 * d * 4
    per_row_bytes = 4 * d * itemsize + 4 * d * 4
    vmem_cap = _vmem_capacity_bytes()
    vmem_budget = int(vmem_cap * 0.75)          # headroom for compiler scratch

    # Wide-D guard: even the smallest legal tile would blow VMEM -> plain JAX.
    # TODO(synk): add a D-axis grid dimension with partial accumulation instead.
    if sub_mult * per_row_bytes + (2 << 20) > vmem_budget:
        return _byol_loss_jax(z1, z2)

    # Row-tile size: per-input byte budget, clamped by VMEM and by a cap that
    # keeps >= target_steps grid steps (megacore sharding + pipeline overlap).
    rows_budget = max(sub_mult,
                      (block_bytes // max(1, d * itemsize)) // sub_mult * sub_mult)
    rows_vmem = max(sub_mult,
                    ((vmem_budget - (2 << 20)) // per_row_bytes) // sub_mult * sub_mult)
    rows_steps = _round_up(pl.cdiv(n, target_steps), sub_mult)
    tile_rows = max(sub_mult, min(rows_budget, rows_vmem, rows_steps))
    if tile_rows >= n:
        tile_rows = n                      # full-extent block (always legal)

    grid = pl.cdiv(n, tile_rows)

    # VMEM limit: 2 inputs x 2 buffers + f32 temporaries + slack, capped at device VMEM.
    vmem_limit = int(min(vmem_cap,
                         max(16 << 20, tile_rows * per_row_bytes + (2 << 20))))

    kernel = functools.partial(_byol_partials_kernel, n_rows=n, tile_rows=tile_rows)

    partials = pl.pallas_call(
        kernel,
        out_shape=jax.ShapeDtypeStruct((grid, _OUT_SUB, _OUT_LANE), jnp.float32),
        grid_spec=pltpu.PrefetchScalarGridSpec(
            num_scalar_prefetch=0,
            grid=(grid,),
            in_specs=[
                pl.BlockSpec((tile_rows, d), lambda i: (i, 0)),
                pl.BlockSpec((tile_rows, d), lambda i: (i, 0)),
            ],
            out_specs=pl.BlockSpec((1, _OUT_SUB, _OUT_LANE), lambda i: (i, 0, 0)),
        ),
        compiler_params=pltpu.CompilerParams(
            dimension_semantics=("parallel",),   # independent tiles -> megacore on v7x
            vmem_limit_bytes=vmem_limit,
        ),
    )(z1, z2)

    # Each tile block holds tile_sum/1024 replicated 8x128 -> contiguous sum.
    total = jnp.sum(partials)
    return (2.0 - 2.0 * total / jnp.float32(n)).astype(jnp.float32)


def _byol_loss_ref(z1, z2):
    z1 = z1.astype(jnp.float32)
    z2 = z2.astype(jnp.float32)
    z1n = z1 / jnp.maximum(jnp.linalg.norm(z1, axis=-1, keepdims=True), _EPS)
    z2n = z2 / jnp.maximum(jnp.linalg.norm(z2, axis=-1, keepdims=True), _EPS)
    return jnp.mean(2.0 - 2.0 * jnp.sum(z1n * z2n, axis=-1))


if __name__ == "__main__":
    key = jax.random.PRNGKey(0)
    ks = jax.random.split(key, 10)

    # 1) Module's real shapes (N=16, D=128): exercises the tiny-input fast path.
    z1 = jax.random.normal(ks[0], (16, 128), dtype=jnp.float32)
    z2 = jax.random.normal(ks[1], (16, 128), dtype=jnp.float32)
    loss = byol_loss(z1, z2)
    jax.block_until_ready(loss)
    assert jnp.allclose(loss, _byol_loss_ref(z1, z2), atol=1e-5, rtol=1e-5)

    # 2) Forced kernel path, multi-tile grid with masked tail (tile_rows=8, grid=6).
    a = jax.random.normal(ks[2], (44, 128), dtype=jnp.float32)
    b = jax.random.normal(ks[3], (44, 128), dtype=jnp.float32)
    loss2 = byol_loss(a, b, block_bytes=8 * 128 * 4, min_kernel_bytes=0)
    jax.block_until_ready(loss2)
    assert jnp.allclose(loss2, _byol_loss_ref(a, b), atol=1e-5, rtol=1e-5)

    # 3) Kernel path with the default budgets + target_steps cap (grid=8, tile_rows=512).
    c = jax.random.normal(ks[4], (4096, 256), dtype=jnp.float32)
    e = jax.random.normal(ks[5], (4096, 256), dtype=jnp.float32)
    loss3 = byol_loss(c, e)
    jax.block_until_ready(loss3)
    assert jnp.allclose(loss3, _byol_loss_ref(c, e), atol=1e-5, rtol=1e-5)

    # 4) Non-128-multiple projection dim (D=200): lane padding must not leak.
    f = jax.random.normal(ks[6], (64, 200), dtype=jnp.float32)
    g = jax.random.normal(ks[7], (64, 200), dtype=jnp.float32)
    loss4 = byol_loss(f, g, min_kernel_bytes=0)
    jax.block_until_ready(loss4)
    assert jnp.allclose(loss4, _byol_loss_ref(f, g), atol=1e-5, rtol=1e-5)

    # 5) bf16 inputs pass straight through; accumulation stays f32 in-kernel.
    h = jax.random.normal(ks[8], (256, 128), dtype=jnp.bfloat16)
    m = jax.random.normal(ks[9], (256, 128), dtype=jnp.bfloat16)
    loss5 = byol_loss(h, m, min_kernel_bytes=0)
    jax.block_until_ready(loss5)
    assert jnp.allclose(loss5, _byol_loss_ref(h, m), atol=1e-4, rtol=1e-4)

    print("KERNEL_OK")
</pallas_src>

<mosaic_0001>
module attributes {stable_mosaic.version = 11 : i64} {
  func.func @_byol_partials_kernel(%arg0: i32, %arg1: memref<8x128xf32, #tpu.memory_space<vmem>>, %arg2: memref<8x128xf32, #tpu.memory_space<vmem>>, %arg3: memref<1x8x128xf32, #tpu.memory_space<vmem>>) attributes {dimension_semantics = [#tpu.dimension_semantics<parallel>], iteration_bounds = array<i64: 6>, scalar_prefetch = 0 : i64, scratch_operands = 0 : i64, tpu.core_type = #tpu.core_type<tc>, window_params = [{transform_indices = @transform_0, window_bounds = array<i64: 8, 128>}, {transform_indices = @transform_1, window_bounds = array<i64: 8, 128>}, {transform_indices = @transform_2, window_bounds = array<i64: 1, 8, 128>}]} {
    %c0 = arith.constant 0 : index
    %c0_0 = arith.constant 0 : index
    %0 = vector.load %arg1[%c0, %c0_0] : memref<8x128xf32, #tpu.memory_space<vmem>>, vector<8x128xf32>
    %c0_1 = arith.constant 0 : index
    %c0_2 = arith.constant 0 : index
    %1 = vector.load %arg2[%c0_1, %c0_2] : memref<8x128xf32, #tpu.memory_space<vmem>>, vector<8x128xf32>
    %2 = arith.mulf %0, %0 : vector<8x128xf32>
    %cst = arith.constant dense<0.000000e+00> : vector<8xf32>
    %3 = vector.multi_reduction <add>, %2, %cst [1] : vector<8x128xf32> to vector<8xf32>
    %4 = vector.shape_cast %3 : vector<8xf32> to vector<8x1xf32>
    %5 = arith.mulf %1, %1 : vector<8x128xf32>
    %cst_3 = arith.constant dense<0.000000e+00> : vector<8xf32>
    %6 = vector.multi_reduction <add>, %5, %cst_3 [1] : vector<8x128xf32> to vector<8xf32>
    %7 = vector.shape_cast %6 : vector<8xf32> to vector<8x1xf32>
    %8 = arith.mulf %0, %1 : vector<8x128xf32>
    %cst_4 = arith.constant dense<0.000000e+00> : vector<8xf32>
    %9 = vector.multi_reduction <add>, %8, %cst_4 [1] : vector<8x128xf32> to vector<8xf32>
    %10 = vector.shape_cast %9 : vector<8xf32> to vector<8x1xf32>
    %cst_5 = arith.constant 1.000000e-24 : f32
    %11 = vector.broadcast %cst_5 : f32 to vector<8x1xf32>
    %12 = arith.maximumf %4, %11 : vector<8x1xf32>
    %13 = math.rsqrt %12 : vector<8x1xf32>
    %cst_6 = arith.constant 1.000000e-24 : f32
    %14 = vector.broadcast %cst_6 : f32 to vector<8x1xf32>
    %15 = arith.maximumf %7, %14 : vector<8x1xf32>
    %16 = math.rsqrt %15 : vector<8x1xf32>
    %17 = arith.mulf %10, %13 : vector<8x1xf32>
    %18 = arith.mulf %17, %16 : vector<8x1xf32>
    %c8_i32 = arith.constant 8 : i32
    %19 = arith.muli %arg0, %c8_i32 : i32
    %20 = tpu.iota {dimensions = array<i32: 0>} : vector<8x1xi32>
    %21 = vector.broadcast %19 : i32 to vector<8x1xi32>
    %22 = arith.addi %21, %20 : vector<8x1xi32>
    %c44_i32 = arith.constant 44 : i32
    %23 = vector.broadcast %c44_i32 : i32 to vector<8x1xi32>
    %24 = arith.cmpi slt, %22, %23 : vector<8x1xi32>
    %cst_7 = arith.constant 0.000000e+00 : f32
    %25 = vector.broadcast %cst_7 : f32 to vector<8x1xf32>
    %26 = arith.select %24, %18, %25 : vector<8x1xi1>, vector<8x1xf32>
    %27 = vector.shape_cast %26 : vector<8x1xf32> to vector<1x8x1xf32>
    %cst_8 = arith.constant dense<0.000000e+00> : vector<1xf32>
    %28 = vector.multi_reduction <add>, %27, %cst_8 [1, 2] : vector<1x8x1xf32> to vector<1xf32>
    %29 = vector.shape_cast %28 : vector<1xf32> to vector<1x1x1xf32>
    %30 = vector.extract %29[0, 0, 0] : f32 from vector<1x1x1xf32>
    %cst_9 = arith.constant 9.765625E-4 : f32
    %31 = arith.mulf %30, %cst_9 : f32
    %32 = vector.broadcast %31 : f32 to vector<1x8x128xf32>
    %c0_10 = arith.constant 0 : index
    %c0_11 = arith.constant 0 : index
    %c0_12 = arith.constant 0 : index
    %33 = vector.load %arg3[%c0_10, %c0_11, %c0_12] : memref<1x8x128xf32, #tpu.memory_space<vmem>>, vector<1x8x128xf32>
    tpu.vector_store %arg3[%c0_10, %c0_11, %c0_12], %32 {strides = array<i32>} : memref<1x8x128xf32, #tpu.memory_space<vmem>>, vector<1x8x128xf32>,
    return
  }
  func.func @transform_0(%arg0: i32) -> (i32, i32) {
    %c0_i32 = arith.constant 0 : i32
    %c0_i32_0 = arith.constant 0 : i32
    return %arg0, %c0_i32 : i32, i32
  }
  func.func @transform_1(%arg0: i32) -> (i32, i32) {
    %c0_i32 = arith.constant 0 : i32
    %c0_i32_0 = arith.constant 0 : i32
    return %arg0, %c0_i32 : i32, i32
  }
  func.func @transform_2(%arg0: i32) -> (i32, i32, i32) {
    %c0_i32 = arith.constant 0 : i32
    %c0_i32_0 = arith.constant 0 : i32
    %c0_i32_1 = arith.constant 0 : i32
    return %arg0, %c0_i32, %c0_i32_0 : i32, i32, i32
  }
}

</mosaic_0001>

<bundles_post_ra>
// kernel: tpu_custom_call.1
= control target key start
LH: loop header
LB: loop body
LE: loop exit
PB: predicated region body
PF: predicated region fallthrough
CT: control target
= control target key end

     0   :  { %7 = vsyncpa [#allocation3], 0  ;;  %s752_s0 = inlined_call_operand.hbm [shape: f32[44,128], index: 0, kind: input, shape index: {}]   ;;  %s753_s1 = inlined_call_operand.hbm [shape: f32[44,128], index: 1, kind: input, shape index: {}]   ;;  %s754_s2 = inlined_call_operand.hbm [shape: f32[6,8,128], index: 2, kind: output, shape index: {}]  }
   0x1   :  { %9 = vsyncpa [#allocation3 + $0x1], 0 }
   0x2   :  { %10 = vsyncpa [#allocation6], 0 }
   0x3   :  { %12 = vsyncpa [#allocation6 + $0x1], 0 }
   0x4   :  { %13 = vsyncpa [#allocation4], 0 }
   0x5   :  { %15 = vsyncpa [#allocation4 + $0x1], 0  ;;  %s585_s9 = smov 0   ;;  %s587_s10 = smov 0  }
   0x6   :  { %s589_s11 = smov 0   ;;  %s591_s12 = smov 0  }
   0x7 LB: > { %s606_s13 = sadd.s32 4294967295, %s568_s12   ;;  %s365_s14 = sadd.s32 4294967294, %s568_s12   ;;  %s568_s12 = sphi %s591_s12, %s764_s12   ;;  %s564_s11 = sphi %s589_s11, %s763_s11   ;;  %s560_s10 = sphi %s587_s10, %s762_s10   ;;  %s556_s9 = sphi %s585_s9, %s761_s9  }
   0x8   : > { %s610_s15 = sadd.s32 1, %s568_s12   ;;  %s28_s16 = sadd.s32 1, %s564_s11 }
   0x9   : > { %s25_s17 = ssub.s32 %s568_s12, %s610_s15  ;;  %p35_p0 = scmp.ne.s32.totalorder %s564_s11, %s560_s10 }
   0xa   : > { %p26_p1 = scmp.eq.s32.totalorder %s25_s17, 0  ;;  %p36_p2 = scmp.eq.s32.totalorder %s568_s12, 0 }
   0xb   : > { %p41_p3 = scmp.ne.s32.totalorder %s560_s10, %s556_s9  ;;  %p42_p4 = scmp.eq.s32.totalorder %s606_s13, 0 }
   0xc   : > { %s622_s18 = scalar_select %p26_p1, %s564_s11, %s28_s16  }
   0xd   : > { %p624_p5 = por %p36_p2, %p35_p0  ;;  %p628_p6 = por %p42_p4, %p41_p3 }
   0xe   : > { %p91_p7 = scmp.eq.s32.totalorder %s606_s13, 5  ;;  %p97_p8 = scmp.eq.s32.totalorder %s365_s14, 5 }
   0xf   : > { %p400_p9 = scmp.lt.s32.totalorder %s568_s12, 6  ;;  %s643_s23 = sand.u32 1, %s564_s11  }
  0x10   : > { %p634_p10 = por %p91_p7, %p35_p0  ;;  %p638_p11 = por %p97_p8, %p41_p3 }
  0x11   : > { %s369_s24 = sshll.u32 %s568_s12, 3  ;;  %s368_s25 = sshll.u32 %s643_s23, 3 }
  0x12   : > { %s125_s28 = scalar_lea.hbm %s752_s0, %s369_s24  ;;  %s121_s30 = scalar_lea.vmem [#allocation2], %s368_s25 }
  0x13   : > { %s127_s29 = sshll.u32 %s125_s28, 4  ;;  %s129_s3 = sshll.u32 %s121_s30, 4  ;;  %s128_s29 = int_to_ptr.hbm [resolvable:$true] %s127_s29  ;;  %s130_s3 = int_to_ptr.vmem [resolvable:$true] %s129_s3 }
  0x14   : > { %p652_p12 = pnand %p400_p9, %p624_p5  ;;  %p372_p13 = scmp.ge.s32.totalorder %s568_s12, 1 }
  0x15   : > { %p153_p0 = scmp.lt.s32.totalorder %s568_s12, 7  ;;  %s118_s5 = scalar_lea.sflag [#allocation3], %s643_s23 }
  0x16   : > { %s438_s6 = sshra.s32 %s128_s29, 4  ;;  %p442_p2 = pneg %p652_p12  ;;  %s439_s6 = int_to_ptr.hbm [resolvable:$true] %s438_s6 }
  0x17   : > { %s440_s7 = scalar_lea.hbm %s439_s6, 8  ;;  %s445_s16 = scalar_lea.hbm %s752_s0, 48 }
  0x18   : > { %p441_p1 = scmp.ne.s32.totalorder %s439_s6, %s440_s7  ;;  %p446_p5 = scmp.lt.s32.totalorder %s439_s6, %s752_s0 }
  0x19   : > { %p447_p7 = scmp.lt.s32.totalorder %s445_s16, %s440_s7 }
  0x1a   : > { %p443_p3 = pnand %p442_p2, %p441_p1 }
  0x1b   : > { %p448_p8 = por %p447_p7, %p446_p5 }
  0x1c   : > { %p444_p4 = pneg %p443_p3 }
  0x1e   : > { %p449_p9 = pnand %p448_p8, %p444_p4 }
  0x20   : > { %452 = shalt.err (!%p449_p9)
}
  0x21   : > { %392 = dma.hbm_to_vmem [thread:$0]  (!%p652_p12), %s128_s29, 128, %s130_s3, %s118_s5  }
  0x22   : > { %p676_p1 = pnand %p372_p13, %p153_p0  ;;  %s144_s30 = scalar_lea.hbm %s753_s1, %s369_s24 }
  0x23   : > { %s146_s6 = sshll.u32 %s144_s30, 4  ;;  %s140_s7 = scalar_lea.vmem [#allocation5], %s368_s25  ;;  %s147_s6 = int_to_ptr.hbm [resolvable:$true] %s146_s6 }
  0x24   : > { %s148_s8 = sshll.u32 %s140_s7, 4  ;;  %s137_s14 = scalar_lea.sflag [#allocation6], %s643_s23  ;;  %s149_s8 = int_to_ptr.vmem [resolvable:$true] %s148_s8 }
  0x25   : > { %s468_s16 = sshra.s32 %s147_s6, 4  ;;  %s475_s5 = scalar_lea.hbm %s753_s1, 48  ;;  %s469_s16 = int_to_ptr.hbm [resolvable:$true] %s468_s16 }
  0x26   : > { %s470_s17 = scalar_lea.hbm %s469_s16, 8  ;;  %p476_p4 = scmp.lt.s32.totalorder %s469_s16, %s753_s1 }
  0x27   : > { %p471_p3 = scmp.ne.s32.totalorder %s469_s16, %s470_s17  ;;  %p477_p5 = scmp.lt.s32.totalorder %s475_s5, %s470_s17 }
  0x29   : > { %p473_p13 = pnand %p471_p3, %p442_p2  ;;  %p478_p7 = por %p477_p5, %p476_p4 }
  0x2b   : > { %p474_p0 = pneg %p473_p13 }
  0x2d   : > { %p479_p8 = pnand %p478_p7, %p474_p0 }
  0x2f   : > { %482 = shalt.err (!%p479_p8)
}
  0x30   : > { %395 = dma.hbm_to_vmem [thread:$0]  (!%p652_p12), %s147_s6, 128, %s149_s8, %s137_s14  }
  0x31   : > { %157 = sbr.rel (%p676_p1) target bundleno = 392 (0x188), region = 28  ;;  %s698_s23 = sand.u32 (!%p676_p1), 1, %s560_s10  }
  0x32   : > { %s701_s25 = sshll.u32 (!%p676_p1), %s698_s23, 3  ;;  %s160_s27 = scalar_lea.sflag (!%p676_p1), [#allocation3], %s698_s23 }
  0x33   : > { %s163_s28 = scalar_lea.vmem (!%p676_p1), [#allocation2], %s701_s25 }
  0x36   : > { %543 = dma.done.wait (%p628_p6), %s160_s27, 128  }
  0x37   : > { %545 = vsyncadd (%p628_p6), %s160_s27, 4294967168  ;;  %s170_s4 = scalar_lea.sflag [#allocation6], %s698_s23  ;;  %s173_s26 = scalar_lea.vmem [#allocation5], %s701_s25 }
  0x38   : > { %547 = dma.done.wait (%p628_p6), %s170_s4, 128  }
  0x39   : > { %549 = vsyncadd (%p628_p6), %s170_s4, 4294967168  ;;  %v200_v0 = vld [vmem:[%s163_s28] sm:$0xff]  ;;  %v201_v1 = vld [vmem:[%s173_s26] sm:$0xff]  ;;  %v236_v14 = vlaneseq  ;;  %s376_s20 = sshll.u32 %s606_s13, 3  ;;  %vm242_vm7 = vcmask 7168   ;;  %s199_s8 = scalar_lea.vmem [#allocation7], %s701_s25 }
  0x3a   : > { %v202_v2 = vmul.f32 %v200_v0, %v200_v0  ;;  %v208_v3 = vmul.f32 %v201_v1, %v200_v0  ;;  %v205_v4 = vmul.f32 %v201_v1, %v201_v1  ;;  %v238_v20 = vstv %s376_s20  ;;  %s267_s7 = scalar_lea.hbm %s754_s2, %s376_s20  ;;  %s269_s14 = sshll.u32 %s199_s8, 4  ;;  %s270_s14 = int_to_ptr.vmem [resolvable:$true] %s269_s14 }
  0x3b   : > { %v237_v19 = vshrl.u32 %v236_v14, 7  ;;  %s271_s16 = sshll.u32 %s267_s7, 4  ;;  %s257_s3 = scalar_lea.sflag [#allocation4], %s698_s23  ;;  %s272_s16 = int_to_ptr.hbm [resolvable:$true] %s271_s16 }
  0x3c   : > { %203 = vadd.xlane.f32.xlu0 %v202_v2  ;;  %209 = vadd.xlane.f32.xlu1 %v208_v3  ;;  %s512_s5 = sshra.s32 %s272_s16, 4  ;;  %s518_s25 = scalar_lea.hbm %s754_s2, 48  ;;  %s513_s5 = int_to_ptr.hbm [resolvable:$true] %s512_s5 }
  0x3d   : > { %v239_v25 = vadd.s32 %v238_v20, %v237_v19  ;;  %s514_s19 = scalar_lea.hbm %s513_s5, 8  ;;  %p519_p9 = scmp.lt.s32.totalorder %s513_s5, %s754_s2 }
  0x3e   : > { %p515_p6 = scmp.ne.s32.totalorder %s513_s5, %s514_s19  ;;  %p520_p1 = scmp.lt.s32.totalorder %s518_s25, %s514_s19 }
  0x3f   : > { %vm240_vm6 = vcmp.lt.s32.totalorder %v239_v25, 44 }
  0x40   : > { %p516_p12 = pnand %p515_p6, %p634_p10  ;;  %p521_p3 = por %p520_p1, %p519_p9 }
  0x42   : > { %p517_p2 = pneg %p516_p12 }
  0x44   : > { %206 = vadd.xlane.f32.xlu0 %v205_v4  ;;  %p522_p13 = pnand %p521_p3, %p517_p2 }
  0xaf   : > { %v204_v5 = vpop.xlane.xlu0 %203  ;;  %v210_v23 = vpop.xlane.xlu1 %209 }
  0xb0   : > { %v211_v6 = vmax.f32 %v204_v5, 1e-24 }
  0xb2   : > { %434 = vrsqrt.f32 %v211_v6  ;;  %vm218_vm1 = vweird.f32 %v211_v6 }
  0xb7   : > { %v207_v7 = vpop.xlane.xlu0 %206 }
  0xb8   : > { %v435_v8 = vpop.eup %434  ;;  %v222_v9 = vmax.f32 %v207_v7, 1e-24 }
  0xb9   : > { %v213_v10 = vmul.f32 %v435_v8, %v211_v6  ;;  %vm219_vm0 = vweird.f32 %v435_v8 }
  0xba   : > { %436 = vrsqrt.f32 %v222_v9  ;;  %vm220_vm2 = vmor %vm218_vm1, %vm219_vm0  ;;  %vm229_vm4 = vweird.f32 %v222_v9 }
  0xbb   : > { %v214_v11 = vmul.f32 %v435_v8, %v213_v10 }
  0xbd   : > { %v215_v12 = vmul.f32 0.5, %v214_v11 }
  0xbf   : > { %v216_v13 = vsub.f32 1.5, %v215_v12 }
  0xc0   : > { %v437_v15 = vpop.eup %436 }
  0xc1   : > { %v224_v16 = vmul.f32 %v437_v15, %v222_v9  ;;  %v217_v18 = vmul.f32 %v435_v8, %v216_v13  ;;  %vm230_vm3 = vweird.f32 %v437_v15 }
  0xc2   : > { %vm231_vm5 = vmor %vm229_vm4, %vm230_vm3 }
  0xc3   : > { %v225_v17 = vmul.f32 %v437_v15, %v224_v16  ;;  %v221_v24 = vsel %vm220_vm2, %v435_v8, %v217_v18 }
  0xc4   : > { %v233_v27 = vmul.f32 %v221_v24, %v210_v23 }
  0xc5   : > { %v226_v21 = vmul.f32 0.5, %v225_v17 }
  0xc7   : > { %v227_v22 = vsub.f32 1.5, %v226_v21 }
  0xc9   : > { %v228_v26 = vmul.f32 %v437_v15, %v227_v22 }
  0xcb   : > { %v232_v28 = vsel %vm231_vm5, %v437_v15, %v228_v26 }
  0xcc   : > { %v234_v29 = vmul.f32 %v233_v27, %v232_v28 }
  0xce   : > { %v241_v30 = vsel %vm240_vm6, %v234_v29, 0.0 }
  0xcf   : > { %v243_v31 = vsel %vm242_vm7, %v241_v30, 0.0 }
  0xd0   : > { %244 = vadd.xlane.f32.xlu1 %v243_v31 }
 0x143   : > { %v245_v32 = vpop.xlane.xlu1 %244 }
 0x144   : > { %v246_v33 = vrot.slane %v245_v32, 4 }
 0x146   : > { %v247_v34 = vadd.f32 %v246_v33, %v245_v32 }
 0x148   : > { %v248_v35 = vrot.slane %v247_v34, 2 }
 0x14a   : > { %v249_v36 = vadd.f32 %v248_v35, %v247_v34 }
 0x14c   : > { %v250_v37 = vrot.slane %v249_v36, 1 }
 0x14e   : > { %v251_v38 = vadd.f32 %v250_v37, %v249_v36 }
 0x150   : > { %381 = vpush %v251_v38 }
 0x181   : > { %s382_s17 = spop %381 }
 0x182   : > { %s253_s29 = smul.f32 0.0009765625, %s382_s17 }
 0x184   : > { %v254_v39 = vstv %s253_s29 }
 0x185   : > { %255 = vst [vmem:[%s199_s8] sm:$0xff] %v254_v39 }
 0x186   : > { %525 = shalt.err (!%p522_p13)
}
 0x187   : > { %387 = dma.vmem_to_hbm [thread:$0]  (%p634_p10), %s270_s14, 128, %s272_s16, %s257_s3  }
 0x188 PF: > { %p401_p0 = scmp.ge.s32.totalorder %s568_s12, 2  ;;  %s283_s23 = sand.u32 1, %s556_s9  }
 0x189   : > { %s284_s4 = scalar_lea.sflag [#allocation4], %s283_s23 }
 0x18a   : > { %p397_p4 = pnand %p401_p0, %p638_p11 }
 0x18c   : > { %p398_p5 = pneg %p397_p4 }
 0x18e   : > { %551 = dma.done.wait (%p398_p5), %s284_s4, 128  }
 0x18f   : > { %553 = vsyncadd (%p398_p5), %s284_s4, 4294967168  ;;  %p18_p7 = scmp.ge.s32.totalorder %s610_s15, 8   ;;  %s761_s9 = smov %s560_s10 }
 0x190   : > { %s762_s10 = smov %s564_s11  ;;  %s763_s11 = smov %s622_s18 }
 0x191   : > { %s764_s12 = smov %s610_s15  ;;  %20 = sbr.rel (!%p18_p7) target bundleno = 7 (0x7), region = 86 }
 0x196   :  { %290 = vsyncpa [#allocation3], 1 }
 0x197   :  { %292 = vsyncpa [#allocation3 + $0x1], 1 }
 0x198   :  { %293 = vsyncpa [#allocation6], 1 }
 0x199   :  { %295 = vsyncpa [#allocation6 + $0x1], 1 }
 0x19a   :  { %296 = vsyncpa [#allocation4], 1 }
 0x19b   :  { %298 = vsyncpa [#allocation4 + $0x1], 1 }

</bundles_post_ra>
